<compile_context>
chip_gen: v6e
topology: v6e:2x2x1
jax: 0.10.0
libtpu: 0.0.40
codegen_flags: <defaults>
</compile_context>

<pallas_src>
import functools

import jax
import jax.numpy as jnp
from jax.experimental import pallas as pl
from jax.experimental.pallas import tpu as pltpu

INPUT_SIZE = 7       # len(features) in the reference script
NUM_CLASSES = 5      # synthetic choice for the LabelEncoder classes
HIDDEN = 128
HEAD_HIDDEN = 64
MAX_BATCH_TILE = 512  # cap so large batches give multiple grid steps (pipelining / dual-TC)


def _round_up(n, m):
    return ((n + m - 1) // m) * m


def _pack_width(num_classes):
    # lanes: [0, C) type logits | C occurrence | C+1 intensity | pad to 8
    return max(8, _round_up(num_classes + 2, 8))


def _model_kernel(x_ref, w1_ref, b1_ref, wh1_ref, bh1_ref, wh2_ref, bh2_ref,
                  out_ref, *, num_classes):
    C = num_classes
    x = x_ref[...]

    # Shared trunk: Linear(in -> 128) + ReLU.
    # TODO(synk): nn.Dropout(0.3) is training-only; inference pass == identity.
    shared = jnp.dot(x, w1_ref[...], preferred_element_type=jnp.float32) + b1_ref[...]
    shared = jnp.maximum(shared, 0.0)

    # Fused head first layers: one (TB,128) @ (128,192) matmul + ReLU.
    h = jnp.dot(shared, wh1_ref[...], preferred_element_type=jnp.float32) + bh1_ref[...]
    h = jnp.maximum(h, 0.0)

    # Fused head second layers: block-diagonal (192, PACK) weight -> one narrow
    # matmul producing packed logits z of shape (TB, PACK).
    z = jnp.dot(h, wh2_ref[...], preferred_element_type=jnp.float32) + bh2_ref[...]

    lane = jax.lax.broadcasted_iota(jnp.int32, z.shape, 1)
    is_type = lane < C
    is_occ = lane == C
    neg_inf = jnp.float32(-jnp.inf)

    # Softmax max over the type lanes only.
    t_logits = jnp.where(is_type, z, neg_inf)
    t_max = jnp.max(t_logits, axis=1, keepdims=True)

    # Single merged exp pass:
    #   lanes < C : exp(z - t_max)        (softmax numerators)
    #   lane == C : exp(-|z|)             (stable sigmoid building block)
    #   otherwise : exp(-inf) = 0
    pre = jnp.where(is_type, z - t_max, jnp.where(is_occ, -jnp.abs(z), neg_inf))
    e = jnp.exp(pre)

    # Softmax (exact divide; masked lanes contribute exact zeros).
    e_soft = jnp.where(is_type, e, 0.0)
    denom = jnp.sum(e_soft, axis=1, keepdims=True)
    t_soft = e_soft / denom

    # Numerically-stable sigmoid from a = exp(-|z|):
    #   z >= 0: 1 / (1 + a)     z < 0: a / (1 + a)
    sig_num = jnp.where(z >= 0.0, 1.0, e)
    sig = sig_num / (1.0 + e)

    # Packed lane layout: [softmax(C) | sigmoid(1) | intensity(1) | zeros].
    out_ref[...] = jnp.where(
        is_type, t_soft,
        jnp.where(is_occ, sig,
                  jnp.where(lane == C + 1, z, 0.0)))


def _fuse_head_params(params, num_classes):
    """Pre-concatenate the three head layers into two fused weight matrices."""
    C = num_classes
    pack = _pack_width(C)
    wh1 = jnp.concatenate([params["wo1"], params["wt1"], params["wi1"]], axis=1)  # (128, 192)
    bh1 = jnp.concatenate([params["bo1"], params["bt1"], params["bi1"]], axis=1)  # (1, 192)

    wh2 = jnp.zeros((3 * HEAD_HIDDEN, pack), jnp.float32)                         # (192, 8)
    wh2 = wh2.at[HEAD_HIDDEN:2 * HEAD_HIDDEN, 0:C].set(params["wt2"])             # type  -> lanes [0,C)
    wh2 = wh2.at[0:HEAD_HIDDEN, C:C + 1].set(params["wo2"])                       # occur -> lane C
    wh2 = wh2.at[2 * HEAD_HIDDEN:, C + 1:C + 2].set(params["wi2"])                # inten -> lane C+1

    bh2 = jnp.zeros((1, pack), jnp.float32)
    bh2 = bh2.at[:, 0:C].set(params["bt2"])
    bh2 = bh2.at[:, C:C + 1].set(params["bo2"])
    bh2 = bh2.at[:, C + 1:C + 2].set(params["bi2"])
    return wh1, bh1, wh2, bh2


@functools.partial(jax.jit, static_argnames=("num_classes",))
def disaster_prediction_forward(x, params, num_classes=NUM_CLASSES):
    """x: (B, input_size) f32.  params: dict of (in,out) weights and (1,out) biases."""
    B, in_features = x.shape
    C = num_classes
    pack = _pack_width(C)

    # Pad feature dim to a multiple of 8 (aligned rows, unmasked loads);
    # w1 gets matching zero rows so the matmul is numerically unchanged.
    in_pad = _round_up(in_features, 8)
    x_p = jnp.pad(x, ((0, 0), (0, in_pad - in_features)))
    w1 = jnp.pad(params["w1"], ((0, in_pad - in_features), (0, 0)))
    b1 = params["b1"]
    wh1, bh1, wh2, bh2 = _fuse_head_params(params, C)

    # Batch tile: 8-row aligned, capped so large batches give several grid steps
    # (BlockSpec double-buffering hides x/out DMA; v7x shards steps over 2 TCs).
    # Working set per step is < 1 MiB, far under the 32 MiB scoped limit and
    # safe against v7x's 64 MiB physical VMEM — do NOT grow TB to fill VMEM;
    # the lever here is grid-step count, not tile size.
    TB = min(MAX_BATCH_TILE, _round_up(B, 8))
    grid = (pl.cdiv(B, TB),)

    batch_block = lambda i: (i, 0)   # x / packed output: tiled over the grid
    resident = lambda i: (0, 0)      # weights/biases: same block every step -> VMEM-resident

    flops = 2 * B * (in_pad * HIDDEN
                     + HIDDEN * 3 * HEAD_HIDDEN
                     + 3 * HEAD_HIDDEN * pack)
    transcendentals = B * pack
    bytes_accessed = 4 * (B * in_pad + B * pack
                          + in_pad * HIDDEN + HIDDEN
                          + HIDDEN * 3 * HEAD_HIDDEN + 3 * HEAD_HIDDEN
                          + 3 * HEAD_HIDDEN * pack + pack)

    packed = pl.pallas_call(
        functools.partial(_model_kernel, num_classes=C),
        out_shape=jax.ShapeDtypeStruct((B, pack), jnp.float32),
        grid=grid,
        in_specs=[
            pl.BlockSpec((TB, in_pad), batch_block),
            pl.BlockSpec((in_pad, HIDDEN), resident),
            pl.BlockSpec((1, HIDDEN), resident),
            pl.BlockSpec((HIDDEN, 3 * HEAD_HIDDEN), resident),
            pl.BlockSpec((1, 3 * HEAD_HIDDEN), resident),
            pl.BlockSpec((3 * HEAD_HIDDEN, pack), resident),
            pl.BlockSpec((1, pack), resident),
        ],
        out_specs=pl.BlockSpec((TB, pack), batch_block),
        compiler_params=pltpu.CompilerParams(
            dimension_semantics=("parallel",),
            vmem_limit_bytes=32 << 20,
        ),
        cost_estimate=pl.CostEstimate(
            flops=flops,
            transcendentals=transcendentals,
            bytes_accessed=bytes_accessed),
    )(x_p, w1, b1, wh1, bh1, wh2, bh2)

    type_pred = packed[:, :C]
    occur = packed[:, C:C + 1]
    intensity = packed[:, C + 1:C + 2]
    return occur, type_pred, intensity


def init_params(key, input_size=INPUT_SIZE, num_classes=NUM_CLASSES):
    """Deterministic synthetic parameters; weights stored as (in, out)."""
    ks = jax.random.split(key, 8)

    def lin(k, fan_in, fan_out):
        kw, kb = jax.random.split(k)
        bound = 1.0 / jnp.sqrt(fan_in)
        w = jax.random.uniform(kw, (fan_in, fan_out), jnp.float32, -bound, bound)
        b = jax.random.uniform(kb, (1, fan_out), jnp.float32, -bound, bound)
        return w, b

    w1, b1 = lin(ks[0], input_size, HIDDEN)
    wo1, bo1 = lin(ks[1], HIDDEN, HEAD_HIDDEN)
    wo2, bo2 = lin(ks[2], HEAD_HIDDEN, 1)
    wt1, bt1 = lin(ks[3], HIDDEN, HEAD_HIDDEN)
    wt2, bt2 = lin(ks[4], HEAD_HIDDEN, num_classes)
    wi1, bi1 = lin(ks[5], HIDDEN, HEAD_HIDDEN)
    wi2, bi2 = lin(ks[6], HEAD_HIDDEN, 1)
    return dict(
        w1=w1, b1=b1,
        wo1=wo1, bo1=bo1, wo2=wo2, bo2=bo2,
        wt1=wt1, bt1=bt1, wt2=wt2, bt2=bt2,
        wi1=wi1, bi1=bi1, wi2=wi2, bi2=bi2,
    )


def _reference_forward(x, p):
    shared = jnp.maximum(x @ p["w1"] + p["b1"], 0.0)
    ho = jnp.maximum(shared @ p["wo1"] + p["bo1"], 0.0)
    occur = jax.nn.sigmoid(ho @ p["wo2"] + p["bo2"])
    ht = jnp.maximum(shared @ p["wt1"] + p["bt1"], 0.0)
    type_pred = jax.nn.softmax(ht @ p["wt2"] + p["bt2"], axis=1)
    hi = jnp.maximum(shared @ p["wi1"] + p["bi1"], 0.0)
    intensity = hi @ p["wi2"] + p["bi2"]
    return occur, type_pred, intensity


if __name__ == "__main__":
    key = jax.random.PRNGKey(0)
    k_x, k_p = jax.random.split(key)

    B = 8
    x = jax.random.normal(k_x, (B, INPUT_SIZE), jnp.float32)
    params = init_params(k_p)

    occur, type_pred, intensity = disaster_prediction_forward(x, params)
    jax.block_until_ready((occur, type_pred, intensity))

    # Cross-check against a pure-JAX reference (un-fused weights).
    r_occ, r_type, r_int = _reference_forward(x, params)
    assert occur.shape == (B, 1)
    assert type_pred.shape == (B, NUM_CLASSES)
    assert intensity.shape == (B, 1)
    assert jnp.allclose(occur, r_occ, atol=1e-4, rtol=1e-4)
    assert jnp.allclose(type_pred, r_type, atol=1e-4, rtol=1e-4)
    assert jnp.allclose(intensity, r_int, atol=1e-4, rtol=1e-4)

    print("KERNEL_OK")
</pallas_src>

<mosaic_0001>
module attributes {stable_mosaic.version = 11 : i64} {
  func.func @_model_kernel(%arg0: i32, %arg1: memref<8x8xf32, #tpu.memory_space<vmem>>, %arg2: memref<8x128xf32, #tpu.memory_space<vmem>>, %arg3: memref<1x128xf32, #tpu.memory_space<vmem>>, %arg4: memref<128x192xf32, #tpu.memory_space<vmem>>, %arg5: memref<1x192xf32, #tpu.memory_space<vmem>>, %arg6: memref<192x8xf32, #tpu.memory_space<vmem>>, %arg7: memref<1x8xf32, #tpu.memory_space<vmem>>, %arg8: memref<8x8xf32, #tpu.memory_space<vmem>>) attributes {dimension_semantics = [#tpu.dimension_semantics<parallel>], iteration_bounds = array<i64: 1>, scalar_prefetch = 0 : i64, scratch_operands = 0 : i64, tpu.core_type = #tpu.core_type<tc>, window_params = [{transform_indices = @transform_0, window_bounds = array<i64: 8, 8>}, {pipeline_mode = #tpu.pipeline_mode<synchronous>, transform_indices = @transform_1, window_bounds = array<i64: 8, 128>}, {pipeline_mode = #tpu.pipeline_mode<synchronous>, transform_indices = @transform_2, window_bounds = array<i64: 1, 128>}, {pipeline_mode = #tpu.pipeline_mode<synchronous>, transform_indices = @transform_3, window_bounds = array<i64: 128, 192>}, {pipeline_mode = #tpu.pipeline_mode<synchronous>, transform_indices = @transform_4, window_bounds = array<i64: 1, 192>}, {pipeline_mode = #tpu.pipeline_mode<synchronous>, transform_indices = @transform_5, window_bounds = array<i64: 192, 8>}, {pipeline_mode = #tpu.pipeline_mode<synchronous>, transform_indices = @transform_6, window_bounds = array<i64: 1, 8>}, {transform_indices = @transform_7, window_bounds = array<i64: 8, 8>}]} {
    %c0 = arith.constant 0 : index
    %c0_0 = arith.constant 0 : index
    %0 = vector.load %arg1[%c0, %c0_0] : memref<8x8xf32, #tpu.memory_space<vmem>>, vector<8x8xf32>
    %c0_1 = arith.constant 0 : index
    %c0_2 = arith.constant 0 : index
    %1 = vector.load %arg2[%c0_1, %c0_2] : memref<8x128xf32, #tpu.memory_space<vmem>>, vector<8x128xf32>
    %cst = arith.constant dense<0.000000e+00> : vector<8x128xf32>
    %2 = tpu.matmul %0, %1, %cst {dimension_numbers = #tpu.dot_dimension_numbers<[1], [0], [0], [1], [0, 0, 1, 1], [], []>} : vector<8x8xf32>, vector<8x128xf32>, vector<8x128xf32> -> vector<8x128xf32>
    %c0_3 = arith.constant 0 : index
    %c0_4 = arith.constant 0 : index
    %3 = vector.load %arg3[%c0_3, %c0_4] : memref<1x128xf32, #tpu.memory_space<vmem>>, vector<1x128xf32>
    %4 = vector.broadcast %3 : vector<1x128xf32> to vector<8x128xf32>
    %5 = arith.addf %2, %4 : vector<8x128xf32>
    %cst_5 = arith.constant 0.000000e+00 : f32
    %6 = vector.broadcast %cst_5 : f32 to vector<8x128xf32>
    %7 = arith.maximumf %5, %6 : vector<8x128xf32>
    %c0_6 = arith.constant 0 : index
    %c0_7 = arith.constant 0 : index
    %8 = vector.load %arg4[%c0_6, %c0_7] : memref<128x192xf32, #tpu.memory_space<vmem>>, vector<128x192xf32>
    %cst_8 = arith.constant dense<0.000000e+00> : vector<8x192xf32>
    %9 = tpu.matmul %7, %8, %cst_8 {dimension_numbers = #tpu.dot_dimension_numbers<[1], [0], [0], [1], [0, 0, 1, 1], [], []>} : vector<8x128xf32>, vector<128x192xf32>, vector<8x192xf32> -> vector<8x192xf32>
    %c0_9 = arith.constant 0 : index
    %c0_10 = arith.constant 0 : index
    %10 = vector.load %arg5[%c0_9, %c0_10] : memref<1x192xf32, #tpu.memory_space<vmem>>, vector<1x192xf32>
    %11 = vector.broadcast %10 : vector<1x192xf32> to vector<8x192xf32>
    %12 = arith.addf %9, %11 : vector<8x192xf32>
    %cst_11 = arith.constant 0.000000e+00 : f32
    %13 = vector.broadcast %cst_11 : f32 to vector<8x192xf32>
    %14 = arith.maximumf %12, %13 : vector<8x192xf32>
    %c0_12 = arith.constant 0 : index
    %c0_13 = arith.constant 0 : index
    %15 = vector.load %arg6[%c0_12, %c0_13] : memref<192x8xf32, #tpu.memory_space<vmem>>, vector<192x8xf32>
    %cst_14 = arith.constant dense<0.000000e+00> : vector<8x8xf32>
    %16 = tpu.matmul %14, %15, %cst_14 {dimension_numbers = #tpu.dot_dimension_numbers<[1], [0], [0], [1], [0, 0, 1, 1], [], []>} : vector<8x192xf32>, vector<192x8xf32>, vector<8x8xf32> -> vector<8x8xf32>
    %c0_15 = arith.constant 0 : index
    %c0_16 = arith.constant 0 : index
    %17 = vector.load %arg7[%c0_15, %c0_16] : memref<1x8xf32, #tpu.memory_space<vmem>>, vector<1x8xf32>
    %18 = vector.broadcast %17 : vector<1x8xf32> to vector<8x8xf32>
    %19 = arith.addf %16, %18 : vector<8x8xf32>
    %20 = tpu.iota {dimensions = array<i32: 1>} : vector<8x8xi32>
    %c5_i32 = arith.constant 5 : i32
    %21 = vector.broadcast %c5_i32 : i32 to vector<8x8xi32>
    %22 = arith.cmpi slt, %20, %21 : vector<8x8xi32>
    %c5_i32_17 = arith.constant 5 : i32
    %23 = vector.broadcast %c5_i32_17 : i32 to vector<8x8xi32>
    %24 = arith.cmpi eq, %20, %23 : vector<8x8xi32>
    %cst_18 = arith.constant 0xFF800000 : f32
    %25 = vector.broadcast %cst_18 : f32 to vector<8x8xf32>
    %26 = arith.select %22, %19, %25 : vector<8x8xi1>, vector<8x8xf32>
    %cst_19 = arith.constant dense<0xFF800000> : vector<8xf32>
    %27 = vector.multi_reduction <maximumf>, %26, %cst_19 [1] : vector<8x8xf32> to vector<8xf32>
    %28 = vector.shape_cast %27 : vector<8xf32> to vector<8x1xf32>
    %29 = vector.broadcast %28 : vector<8x1xf32> to vector<8x8xf32>
    %30 = arith.subf %19, %29 : vector<8x8xf32>
    %31 = math.absf %19 : vector<8x8xf32>
    %cst_20 = arith.constant 0.000000e+00 : f32
    %32 = vector.broadcast %cst_20 : f32 to vector<8x8xf32>
    %33 = arith.subf %32, %31 : vector<8x8xf32>
    %cst_21 = arith.constant 0xFF800000 : f32
    %34 = vector.broadcast %cst_21 : f32 to vector<8x8xf32>
    %35 = arith.select %24, %33, %34 : vector<8x8xi1>, vector<8x8xf32>
    %36 = arith.select %22, %30, %35 : vector<8x8xi1>, vector<8x8xf32>
    %37 = math.exp %36 : vector<8x8xf32>
    %cst_22 = arith.constant 0.000000e+00 : f32
    %38 = vector.broadcast %cst_22 : f32 to vector<8x8xf32>
    %39 = arith.select %22, %37, %38 : vector<8x8xi1>, vector<8x8xf32>
    %cst_23 = arith.constant dense<0.000000e+00> : vector<8xf32>
    %40 = vector.multi_reduction <add>, %39, %cst_23 [1] : vector<8x8xf32> to vector<8xf32>
    %41 = vector.shape_cast %40 : vector<8xf32> to vector<8x1xf32>
    %42 = vector.broadcast %41 : vector<8x1xf32> to vector<8x8xf32>
    %43 = arith.divf %39, %42 : vector<8x8xf32>
    %cst_24 = arith.constant 0.000000e+00 : f32
    %44 = vector.broadcast %cst_24 : f32 to vector<8x8xf32>
    %45 = arith.cmpf oge, %19, %44 : vector<8x8xf32>
    %cst_25 = arith.constant 1.000000e+00 : f32
    %46 = vector.broadcast %cst_25 : f32 to vector<8x8xf32>
    %47 = arith.select %45, %46, %37 : vector<8x8xi1>, vector<8x8xf32>
    %cst_26 = arith.constant 1.000000e+00 : f32
    %48 = vector.broadcast %cst_26 : f32 to vector<8x8xf32>
    %49 = arith.addf %48, %37 : vector<8x8xf32>
    %50 = arith.divf %47, %49 : vector<8x8xf32>
    %c6_i32 = arith.constant 6 : i32
    %51 = vector.broadcast %c6_i32 : i32 to vector<8x8xi32>
    %52 = arith.cmpi eq, %20, %51 : vector<8x8xi32>
    %cst_27 = arith.constant 0.000000e+00 : f32
    %53 = vector.broadcast %cst_27 : f32 to vector<8x8xf32>
    %54 = arith.select %52, %19, %53 : vector<8x8xi1>, vector<8x8xf32>
    %55 = arith.select %24, %50, %54 : vector<8x8xi1>, vector<8x8xf32>
    %56 = arith.select %22, %43, %55 : vector<8x8xi1>, vector<8x8xf32>
    %c0_28 = arith.constant 0 : index
    %c0_29 = arith.constant 0 : index
    %57 = vector.load %arg8[%c0_28, %c0_29] : memref<8x8xf32, #tpu.memory_space<vmem>>, vector<8x8xf32>
    tpu.vector_store %arg8[%c0_28, %c0_29], %56 {strides = array<i32>} : memref<8x8xf32, #tpu.memory_space<vmem>>, vector<8x8xf32>,
    return
  }
  func.func @transform_0(%arg0: i32) -> (i32, i32) {
    %c0_i32 = arith.constant 0 : i32
    %c0_i32_0 = arith.constant 0 : i32
    return %arg0, %c0_i32 : i32, i32
  }
  func.func @transform_1(%arg0: i32) -> (i32, i32) {
    %c0_i32 = arith.constant 0 : i32
    %c0_i32_0 = arith.constant 0 : i32
    %c0_i32_1 = arith.constant 0 : i32
    return %c0_i32, %c0_i32_0 : i32, i32
  }
  func.func @transform_2(%arg0: i32) -> (i32, i32) {
    %c0_i32 = arith.constant 0 : i32
    %c0_i32_0 = arith.constant 0 : i32
    %c0_i32_1 = arith.constant 0 : i32
    return %c0_i32, %c0_i32_0 : i32, i32
  }
  func.func @transform_3(%arg0: i32) -> (i32, i32) {
    %c0_i32 = arith.constant 0 : i32
    %c0_i32_0 = arith.constant 0 : i32
    %c0_i32_1 = arith.constant 0 : i32
    return %c0_i32, %c0_i32_0 : i32, i32
  }
  func.func @transform_4(%arg0: i32) -> (i32, i32) {
    %c0_i32 = arith.constant 0 : i32
    %c0_i32_0 = arith.constant 0 : i32
    %c0_i32_1 = arith.constant 0 : i32
    return %c0_i32, %c0_i32_0 : i32, i32
  }
  func.func @transform_5(%arg0: i32) -> (i32, i32) {
    %c0_i32 = arith.constant 0 : i32
    %c0_i32_0 = arith.constant 0 : i32
    %c0_i32_1 = arith.constant 0 : i32
    return %c0_i32, %c0_i32_0 : i32, i32
  }
  func.func @transform_6(%arg0: i32) -> (i32, i32) {
    %c0_i32 = arith.constant 0 : i32
    %c0_i32_0 = arith.constant 0 : i32
    %c0_i32_1 = arith.constant 0 : i32
    return %c0_i32, %c0_i32_0 : i32, i32
  }
  func.func @transform_7(%arg0: i32) -> (i32, i32) {
    %c0_i32 = arith.constant 0 : i32
    %c0_i32_0 = arith.constant 0 : i32
    return %arg0, %c0_i32 : i32, i32
  }
}

</mosaic_0001>

<bundles_post_ra>
// kernel: disaster_prediction_forward.1
= control target key start
LH: loop header
LB: loop body
LE: loop exit
PB: predicated region body
PF: predicated region fallthrough
CT: control target
= control target key end

     0   :  { %vm35_vm0 = vcmask 64512   ;;  %v386_v0 = vmov 0.0   ;;  %vm387_vm1 = vmmov 0   ;;  %vm258_vm2 = vcmask 523264   ;;  %s651_s1 = inlined_call_operand.vmem [shape: f32[8,128], index: 1, kind: input, shape index: {}]   ;;  %s652_s0 = inlined_call_operand.vmem [shape: f32[8,8], index: 0, kind: input, shape index: {}]   ;;  %s653_s3 = inlined_call_operand.vmem [shape: f32[128,192], index: 3, kind: input, shape index: {}]   ;;  %s654_s5 = inlined_call_operand.vmem [shape: f32[192,8], index: 5, kind: input, shape index: {}]   ;;  %s655_s2 = inlined_call_operand.vmem [shape: f32[1,128], index: 2, kind: input, shape index: {}]   ;;  %s656_s4 = inlined_call_operand.vmem [shape: f32[1,192], index: 4, kind: input, shape index: {}]   ;;  %s657_s6 = inlined_call_operand.vmem [shape: f32[1,8], index: 6, kind: input, shape index: {}]   ;;  %s658_s7 = inlined_call_operand.vmem [shape: f32[8,8], index: 7, kind: output, shape index: {}]  }
   0x1   :  { %373 = vmatprep.subr.mxu1 %v386_v0  ;;  %v27_v1 = vld [vmem:[%s651_s1] sm:$0xff]  ;;  %375 = vmatprep.mubr.msk.f32.mxu1 %vm387_vm1, %v386_v0  ;;  %v141_v3 = vld [vmem:[%s653_s3 + $0xf8] sm:$0xff]  ;;  %v140_v4 = vld [vmem:[%s653_s3 + $0xf0] sm:$0xff] }
   0x2   :  { %v26_v2 = vld [vmem:[%s652_s0] sm:$0xff]  ;;  %374 = vmatpush3.msra.mxu1 %v27_v1  ;;  %v139_v5 = vld [vmem:[%s653_s3 + $0xe8] sm:$0xff]  ;;  %262 = vmatprep.subr.mxu0 %v386_v0  ;;  %v137_v7 = vld [vmem:[%s653_s3 + $0xd8] sm:$0xff]  ;;  %v144_v1 = vlaneseq }
   0x3   :  { %376 = vmatmul.mubr.msk.f32.vlgmr.msra.gmra.mxu1 %vm35_vm0, %v26_v2  ;;  %154 = vmatprep.subr.mxu1 %v141_v3  ;;  %v138_v6 = vld [vmem:[%s653_s3 + $0xe0] sm:$0xff]  ;;  %v136_v8 = vld [vmem:[%s653_s3 + $0xd0] sm:$0xff]  ;;  %v135_v9 = vld [vmem:[%s653_s3 + $0xc8] sm:$0xff] }
   0x4   :  { %155 = vmatpush1.msra.mxu1 %v140_v4  ;;  %218 = vmatprep.mubr.f32.mxu1 %v386_v0  ;;  %v134_v10 = vld [vmem:[%s653_s3 + $0xc0] sm:$0xff]  ;;  %v133_v11 = vld [vmem:[%s653_s3 + $0xb8] sm:$0xff]  ;;  %v132_v12 = vld [vmem:[%s653_s3 + $0xb0] sm:$0xff]  ;;  %v145_v2 = vshrl.u32 %v144_v1, 7 }
   0x5   :  { %156 = vmatprep.subr.mxu1 %v139_v5  ;;  %v131_v13 = vld [vmem:[%s653_s3 + $0xa8] sm:$0xff]  ;;  %v130_v14 = vld [vmem:[%s653_s3 + $0xa0] sm:$0xff]  ;;  %v129_v15 = vld [vmem:[%s653_s3 + $0x98] sm:$0xff] }
   0x6   :  { %157 = vmatpush1.msra.mxu1 %v138_v6  ;;  %v128_v16 = vld [vmem:[%s653_s3 + $0x90] sm:$0xff]  ;;  %v127_v17 = vld [vmem:[%s653_s3 + $0x88] sm:$0xff]  ;;  %v126_v18 = vld [vmem:[%s653_s3 + $0x80] sm:$0xff]  ;;  %v146_v3 = vsub.s32 0, %v145_v2  ;;  %v150_v5 = vsub.s32 1, %v145_v2 }
   0x7   :  { %158 = vmatprep.subr.mxu1 %v137_v7  ;;  %v125_v19 = vld [vmem:[%s653_s3 + $0x78] sm:$0xff]  ;;  %v124_v20 = vld [vmem:[%s653_s3 + $0x70] sm:$0xff]  ;;  %v123_v21 = vld [vmem:[%s653_s3 + $0x68] sm:$0xff] }
   0x8   :  { %159 = vmatpush1.msra.mxu1 %v136_v8  ;;  %v122_v22 = vld [vmem:[%s653_s3 + $0x60] sm:$0xff]  ;;  %v121_v23 = vld [vmem:[%s653_s3 + $0x58] sm:$0xff]  ;;  %v120_v24 = vld [vmem:[%s653_s3 + $0x50] sm:$0xff] }
   0x9   :  { %160 = vmatprep.subr.mxu1 %v135_v9  ;;  %v119_v25 = vld [vmem:[%s653_s3 + $0x48] sm:$0xff]  ;;  %v118_v26 = vld [vmem:[%s653_s3 + $0x40] sm:$0xff]  ;;  %v117_v27 = vld [vmem:[%s653_s3 + $0x38] sm:$0xff] }
   0xa   :  { %161 = vmatpush1.msra.mxu1 %v134_v10  ;;  %v116_v28 = vld [vmem:[%s653_s3 + $0x30] sm:$0xff]  ;;  %v115_v29 = vld [vmem:[%s653_s3 + $0x28] sm:$0xff]  ;;  %v114_v30 = vld [vmem:[%s653_s3 + $0x20] sm:$0xff] }
   0xb   :  { %162 = vmatprep.subr.mxu1 %v133_v11  ;;  %v113_v31 = vld [vmem:[%s653_s3 + $0x18] sm:$0xff]  ;;  %v112_v32 = vld [vmem:[%s653_s3 + $0x10] sm:$0xff]  ;;  %v111_v33 = vld [vmem:[%s653_s3 + $0x8] sm:$0xff] }
   0xc   :  { %163 = vmatpush1.msra.mxu1 %v132_v12  ;;  %v110_v34 = vld [vmem:[%s653_s3] sm:$0xff]  ;;  %v242_v35 = vld [vmem:[%s654_s5 + $0x78] sm:$0xff]  ;;  %v241_v36 = vld [vmem:[%s654_s5 + $0x70] sm:$0xff] }
   0xd   :  { %164 = vmatprep.subr.mxu1 %v131_v13  ;;  %263 = vmatpush1.msra.mxu0 %v242_v35  ;;  %v240_v37 = vld [vmem:[%s654_s5 + $0x68] sm:$0xff]  ;;  %v239_v38 = vld [vmem:[%s654_s5 + $0x60] sm:$0xff]  ;;  %v238_v39 = vld [vmem:[%s654_s5 + $0x58] sm:$0xff] }
   0xe   :  { %165 = vmatpush1.msra.mxu1 %v130_v14  ;;  %264 = vmatprep.subr.mxu0 %v386_v0  ;;  %v237_v40 = vld [vmem:[%s654_s5 + $0x50] sm:$0xff]  ;;  %v236_v41 = vld [vmem:[%s654_s5 + $0x48] sm:$0xff]  ;;  %v235_v42 = vld [vmem:[%s654_s5 + $0x40] sm:$0xff] }
   0xf   :  { %166 = vmatprep.subr.mxu1 %v129_v15  ;;  %265 = vmatpush1.msra.mxu0 %v241_v36  ;;  %v234_v43 = vld [vmem:[%s654_s5 + $0x38] sm:$0xff]  ;;  %v233_v44 = vld [vmem:[%s654_s5 + $0x30] sm:$0xff]  ;;  %v232_v45 = vld [vmem:[%s654_s5 + $0x28] sm:$0xff] }
  0x10   :  { %167 = vmatpush1.msra.mxu1 %v128_v16  ;;  %266 = vmatprep.subr.mxu0 %v386_v0  ;;  %v231_v46 = vld [vmem:[%s654_s5 + $0x20] sm:$0xff]  ;;  %v230_v47 = vld [vmem:[%s654_s5 + $0x18] sm:$0xff]  ;;  %v229_v48 = vld [vmem:[%s654_s5 + $0x10] sm:$0xff] }
  0x11   :  { %168 = vmatprep.subr.mxu1 %v127_v17  ;;  %267 = vmatpush1.msra.mxu0 %v240_v37  ;;  %v228_v49 = vld [vmem:[%s654_s5 + $0x8] sm:$0xff]  ;;  %v227_v50 = vld [vmem:[%s654_s5] sm:$0xff]  ;;  %v250_v51 = vld [vmem:[%s654_s5 + $0xb8] sm:$0xff] }
  0x12   :  { %169 = vmatpush1.msra.mxu1 %v126_v18  ;;  %268 = vmatprep.subr.mxu0 %v386_v0  ;;  %v249_v52 = vld [vmem:[%s654_s5 + $0xb0] sm:$0xff]  ;;  %v248_v53 = vld [vmem:[%s654_s5 + $0xa8] sm:$0xff]  ;;  %v247_v54 = vld [vmem:[%s654_s5 + $0xa0] sm:$0xff] }
  0x13   :  { %170 = vmatprep.subr.mxu1 %v125_v19  ;;  %269 = vmatpush1.msra.mxu0 %v239_v38  ;;  %v367_v55 = vld [vmem:[%s655_s2] ss:$0 sm:$0xff]  ;;  %v246_v60 = vld [vmem:[%s654_s5 + $0x98] sm:$0xff]  ;;  %v245_v61 = vld [vmem:[%s654_s5 + $0x90] sm:$0xff] }
  0x14   :  { %171 = vmatpush1.msra.mxu1 %v124_v20  ;;  %270 = vmatprep.subr.mxu0 %v386_v0  ;;  %v244_v62 = vld [vmem:[%s654_s5 + $0x88] sm:$0xff]  ;;  %v243_v63 = vld [vmem:[%s654_s5 + $0x80] sm:$0xff] }
  0x15   :  { %172 = vmatprep.subr.mxu1 %v123_v21  ;;  %271 = vmatpush1.msra.mxu0 %v238_v39  ;;  %v142_v4 = vld [vmem:[%s656_s4] sm:$0x3] }
  0x16   :  { %173 = vmatpush1.msra.mxu1 %v122_v22  ;;  %272 = vmatprep.subr.mxu0 %v386_v0  ;;  %v147_v6 = vrot.slane %v142_v4, %v146_v3  ;;  %v151_v7 = vrot.slane %v142_v4, %v150_v5  ;;  %v369_v14 = vld [vmem:[%s657_s6] ss:$0 sm:$0xff] }
  0x17   :  { %174 = vmatprep.subr.mxu1 %v121_v23  ;;  %273 = vmatpush1.msra.mxu0 %v237_v40 }
  0x18   :  { %175 = vmatpush1.msra.mxu1 %v120_v24  ;;  %274 = vmatprep.subr.mxu0 %v386_v0 }
  0x19   :  { %176 = vmatprep.subr.mxu1 %v119_v25  ;;  %275 = vmatpush1.msra.mxu0 %v236_v41 }
  0x1a   :  { %177 = vmatpush1.msra.mxu1 %v118_v26  ;;  %276 = vmatprep.subr.mxu0 %v386_v0 }
  0x1b   :  { %178 = vmatprep.subr.mxu1 %v117_v27  ;;  %277 = vmatpush1.msra.mxu0 %v235_v42 }
  0x1c   :  { %179 = vmatpush1.msra.mxu1 %v116_v28  ;;  %278 = vmatprep.subr.mxu0 %v386_v0 }
  0x1d   :  { %180 = vmatprep.subr.mxu1 %v115_v29  ;;  %279 = vmatpush1.msra.mxu0 %v234_v43 }
  0x1e   :  { %181 = vmatpush1.msra.mxu1 %v114_v30  ;;  %280 = vmatprep.subr.mxu0 %v386_v0 }
  0x1f   :  { %182 = vmatprep.subr.mxu1 %v113_v31  ;;  %281 = vmatpush1.msra.mxu0 %v233_v44 }
  0x20   :  { %183 = vmatpush1.msra.mxu1 %v112_v32  ;;  %282 = vmatprep.subr.mxu0 %v386_v0 }
  0x21   :  { %184 = vmatprep.subr.mxu1 %v111_v33  ;;  %283 = vmatpush1.msra.mxu0 %v232_v45 }
  0x22   :  { %185 = vmatpush1.msra.mxu1 %v110_v34  ;;  %284 = vmatprep.subr.mxu0 %v386_v0 }
  0x23   :  { %285 = vmatpush1.msra.mxu0 %v231_v46 }
  0x24   :  { %286 = vmatprep.subr.mxu0 %v386_v0 }
  0x25   :  { %287 = vmatpush1.msra.mxu0 %v230_v47 }
  0x26   :  { %288 = vmatprep.subr.mxu0 %v386_v0 }
  0x27   :  { %289 = vmatpush1.msra.mxu0 %v229_v48 }
  0x28   :  { %290 = vmatprep.subr.mxu0 %v386_v0 }
  0x29   :  { %291 = vmatpush1.msra.mxu0 %v228_v49 }
  0x2a   :  { %292 = vmatprep.subr.mxu0 %v386_v0 }
  0x2b   :  { %293 = vmatpush1.msra.mxu0 %v227_v50 }
  0x2c   :  { %310 = vmatprep.subr.mxu0 %v386_v0 }
  0x2d   :  { %311 = vmatpush2.msra.mxu0 %v250_v51 }
  0x2e   :  { %312 = vmatprep.subr.mxu0 %v386_v0 }
  0x2f   :  { %313 = vmatpush2.msra.mxu0 %v249_v52 }
  0x30   :  { %314 = vmatprep.subr.mxu0 %v386_v0 }
  0x31   :  { %315 = vmatpush2.msra.mxu0 %v248_v53 }
  0x32   :  { %316 = vmatprep.subr.mxu0 %v386_v0 }
  0x33   :  { %317 = vmatpush2.msra.mxu0 %v247_v54 }
  0x34   :  { %318 = vmatprep.subr.mxu0 %v386_v0 }
  0x35   :  { %319 = vmatpush2.msra.mxu0 %v246_v60 }
  0x36   :  { %320 = vmatprep.subr.mxu0 %v386_v0 }
  0x37   :  { %321 = vmatpush2.msra.mxu0 %v245_v61 }
  0x38   :  { %322 = vmatprep.subr.mxu0 %v386_v0 }
  0x39   :  { %323 = vmatpush2.msra.mxu0 %v244_v62 }
  0x3a   :  { %324 = vmatprep.subr.mxu0 %v386_v0  ;;  %v333_v0 = vand.u32 127, %v144_v1 }
  0x3b   :  { %325 = vmatpush2.msra.mxu0 %v243_v63 }
  0x3c   :  { %vm334_vm3 = vcmp.lt.s32.totalorder %v333_v0, 5  ;;  %vm335_vm4 = vcmp.eq.s32.totalorder %v333_v0, 5  ;;  %vm358_vm6 = vcmp.eq.s32.totalorder %v333_v0, 6 }
  0xc3   :  { %v105_v56 = vpop.f32.mrf.mxu1 }
  0xc4   :  { %v106_v57 = vadd.f32 %v367_v55, %v105_v56 }
  0xc5   :  { %v377_v58 = vpop.f32.mrf.mxu1 }
  0xc6   :  { %v109_v59 = vmax.f32 %v106_v57, 0.0 }
  0xc8   :  { %219 = vmatmul.mubr.f32.vlgmr.msra.gmra.mxu1 %v109_v59 }
 0x188   :  { %v220_v8 = vpop.f32.mrf.mxu1 }
 0x189   :  { %v221_v9 = vadd.f32 %v220_v8, %v147_v6 }
 0x18a   :  { %v222_v10 = vpop.f32.mrf.mxu1 }
 0x18b   :  { %v223_v11 = vadd.f32 %v222_v10, %v151_v7  ;;  %v225_v13 = vmax.f32 %v221_v9, 0.0 }
 0x18d   :  { %v226_v12 = vmax.f32 %v223_v11, 0.0 }
 0x18f   :  { %370 = vmatprep.mubr.msk.f32.mxu0 %vm258_vm2, %v226_v12 }
 0x190   :  { %327 = vmatmul.mubr.f32.vlgmr.msra.gmra.mxu0 %v225_v13 }
 0x250   :  { %v328_v15 = vpop.f32.mrf.mxu0 }
 0x251   :  { %v329_v16 = vadd.f32 %v369_v14, %v328_v15 }
 0x252   :  { %v330_v17 = vpop.f32.mrf.mxu0 }
 0x253   :  { %v336_v18 = vsel %vm334_vm3, %v329_v16, -inf  ;;  %v341_v20 = vand.u32 2147483647, %v329_v16  ;;  %vm353_vm5 = vcmp.ge.f32.partialorder %v329_v16, 0.0  ;;  %v359_v34 = vsel %vm358_vm6, %v329_v16, 0.0 }
 0x254   :  { %v337_v19 = vsel %vm35_vm0, %v336_v18, -inf }
 0x255   :  { %338 = vmax.xlane.f32.xlu0 %v337_v19  ;;  %v342_v21 = vsub.f32 0.0, %v341_v20 }
 0x257   :  { %v343_v24 = vsel %vm335_vm4, %v342_v21, -inf }
 0x2de   :  { %v339_v22 = vpop.xlane.xlu0 %338 }
 0x2df   :  { %v340_v23 = vsub.f32 %v329_v16, %v339_v22 }
 0x2e1   :  { %v344_v25 = vsel %vm334_vm3, %v340_v23, %v343_v24 }
 0x2e2   :  { %v345_v26 = vmul.f32 1.442695, %v344_v25 }
 0x2e4   :  { %380 = vpow2.f32 %v345_v26 }
 0x2f1   :  { %v381_v27 = vpop.eup %380 }
 0x2f2   :  { %v355_v28 = vadd.f32 1.0, %v381_v27  ;;  %v347_v29 = vsel %vm334_vm3, %v381_v27, 0.0  ;;  %v354_v32 = vsel %vm353_vm5, 1.0, %v381_v27 }
 0x2f3   :  { %v348_v30 = vsel %vm35_vm0, %v347_v29, 0.0 }
 0x2f4   :  { %382 = vrcp.f32 %v355_v28  ;;  %349 = vadd.xlane.f32.xlu0 %v348_v30 }
 0x301   :  { %v383_v31 = vpop.eup %382 }
 0x302   :  { %v357_v33 = vmul.f32 %v383_v31, %v354_v32 }
 0x304   :  { %v360_v35 = vsel %vm335_vm4, %v357_v33, %v359_v34 }
 0x37d   :  { %v350_v36 = vpop.xlane.xlu0 %349 }
 0x37e   :  { %384 = vrcp.f32 %v350_v36 }
 0x38b   :  { %v385_v37 = vpop.eup %384 }
 0x38c   :  { %v352_v38 = vmul.f32 %v385_v37, %v347_v29 }
 0x38e   :  { %v361_v39 = vsel %vm334_vm3, %v352_v38, %v360_v35 }
 0x38f   :  { %362 = vst.msk [vmem:[%s658_s7] sm:$0xff] %vm35_vm0, %v361_v39 }

</bundles_post_ra>
